<compile_context>
chip_gen: v6e
topology: v6e:2x2x1
jax: 0.10.0
libtpu: 0.0.40
codegen_flags: <defaults>
</compile_context>

<pallas_src>
import functools

import jax
import jax.numpy as jnp
from jax.experimental import pallas as pl
from jax.experimental.pallas import tpu as pltpu


# ----------------------------------------------------------------------------
# Fused kernel (single grid step, full-array VMEM blocks):
#   p_ref  : (KC, N*Lout)    im2col slab of the zero-upsampled, padded input
#   w_ref  : (Cout, KC)      flipped / flattened ConvTranspose1d weight
#   gb_ref : (Cout, 2)       [:,0] = gamma, [:,1] = beta
#   o_ref  : (N, Cout, Lout) output in PyTorch layout
# ----------------------------------------------------------------------------
def _fused_deconv_bn_relu_kernel(p_ref, w_ref, gb_ref, o_ref, *,
                                 n_batch, l_out, eps):
    # One MXU matmul for the whole batch; result stays resident in vregs.
    y = jnp.dot(w_ref[...], p_ref[...],
                preferred_element_type=jnp.float32)           # (Cout, N*Lout)

    inv_count = jnp.float32(1.0 / (n_batch * l_out))

    # Per-channel batch statistics over the fused (N*Lout) lane dim.
    mean = jnp.sum(y, axis=-1, keepdims=True) * inv_count     # (Cout, 1)
    d = y - mean                                              # centered copy
    var = jnp.sum(d * d, axis=-1, keepdims=True) * inv_count  # (Cout, 1)
    # `d` is dead from here on -> BN apply reads `y` directly.

    invstd = jax.lax.rsqrt(var + jnp.float32(eps))
    scale = gb_ref[:, 0:1] * invstd                           # gamma * invstd
    shift = gb_ref[:, 1:2] - mean * scale                     # beta - mean*scale

    z = jnp.maximum(y * scale + shift, jnp.float32(0.0))      # (Cout, N*Lout)

    # Static lane-sliced stores -> output already in (N, Cout, Lout) layout,
    # no wrapper transpose of the result.
    for n in range(n_batch):
        o_ref[n] = z[:, n * l_out:(n + 1) * l_out]


# ----------------------------------------------------------------------------
# Wrapper: concat + deconv lowering glue + single fused pallas_call.
# ----------------------------------------------------------------------------
def concat_deconv_bn_relu_1d(xs, weight, bias, gamma, beta, *,
                             stride=2, padding=1, output_padding=0,
                             dilation=1, eps=1e-5):
    """xs: list of (N, Ci, Lin) arrays (concatenated on the channel axis).
    weight: (Cin, Cout, K) ConvTranspose1d weight.  Returns (N, Cout, Lout)."""
    # torch.cat(x, dim=1): trivial channel concat, plain JAX glue.
    x = jnp.concatenate(xs, axis=1).astype(jnp.float32)       # (N, Cin, Lin)
    N, Cin, Lin = x.shape
    Cin_w, Cout, K = weight.shape
    assert Cin == Cin_w, (Cin, Cin_w)
    s, p, op, d = stride, padding, output_padding, dilation
    Lout = (Lin - 1) * s - 2 * p + d * (K - 1) + op + 1

    pad_l = d * (K - 1) - p
    pad_r = d * (K - 1) - p + op
    assert pad_l >= 0 and pad_r >= 0, "padding > dilation*(K-1) not supported"

    # Small transpose so the im2col slab lands directly in the matmul layout
    # (K*Cin rows, N*Lout lanes) with no transpose of the big slab.
    x_t = jnp.transpose(x, (1, 0, 2))                          # (Cin, N, Lin)

    # ConvTranspose1d == zero-upsample by stride + pad + stride-1 conv with
    # the flipped kernel.  Upsample + pad in ONE op via interior padding.
    x_pad = jax.lax.pad(x_t, jnp.float32(0.0),
                        ((0, 0, 0), (0, 0, 0), (pad_l, pad_r, s - 1)))
    # x_pad: (Cin, N, Lout + d*(K-1))

    # im2col: P[k*Cin + ci, n*Lout + l] = x_pad[ci, n, l + k*d]
    # TODO(synk): for scaled-up shapes, a polyphase split over l mod s (no
    # zero-upsampling) removes the structural zeros from this contraction.
    P = jnp.concatenate([x_pad[:, :, k * d:k * d + Lout] for k in range(K)],
                        axis=0).reshape(K * Cin, N * Lout)     # (KC, N*Lout)
    KC = K * Cin

    # Weight: (Cin, Cout, K) -> flipped taps -> (Cout, K*Cin), kk = k*Cin + ci.
    w_mat = jnp.transpose(weight[:, :, ::-1].astype(jnp.float32),
                          (1, 2, 0)).reshape(Cout, KC)         # (Cout, KC)

    # NOTE: `bias` is intentionally NOT used.  BatchNorm with batch statistics
    # subtracts the per-channel batch mean, so the constant per-channel deconv
    # bias cancels exactly (standard Conv+BN folding).  If this block were run
    # with running-stats (eval) BN, the bias would have to be re-added.
    del bias

    gb = jnp.stack([gamma.astype(jnp.float32),
                    beta.astype(jnp.float32)], axis=1)         # (Cout, 2)

    kern = functools.partial(_fused_deconv_bn_relu_kernel,
                             n_batch=N, l_out=Lout, eps=float(eps))

    cost = pl.CostEstimate(
        flops=2 * Cout * KC * N * Lout + 8 * Cout * N * Lout,
        transcendentals=Cout,
        bytes_accessed=4 * (KC * N * Lout + Cout * KC + 2 * Cout
                            + N * Cout * Lout))

    out = pl.pallas_call(
        kern,
        out_shape=jax.ShapeDtypeStruct((N, Cout, Lout), jnp.float32),
        grid=(1,),
        in_specs=[
            pl.BlockSpec((KC, N * Lout), lambda i: (0, 0)),
            pl.BlockSpec((Cout, KC), lambda i: (0, 0)),
            pl.BlockSpec((Cout, 2), lambda i: (0, 0)),
        ],
        out_specs=pl.BlockSpec((N, Cout, Lout), lambda i: (0, 0, 0)),
        compiler_params=pltpu.CompilerParams(
            dimension_semantics=("arbitrary",)),
        cost_estimate=cost,
    )(P, w_mat, gb)
    return out


# ----------------------------------------------------------------------------
# Pure-JAX reference (direct ConvTranspose1d definition, WITH bias) + BN + ReLU
# ----------------------------------------------------------------------------
def _reference(xs, weight, bias, gamma, beta, stride, padding,
               output_padding, dilation, eps=1e-5):
    x = jnp.concatenate(xs, axis=1).astype(jnp.float32)
    N, Cin, Lin = x.shape
    _, Cout, K = weight.shape
    s, p, op, d = stride, padding, output_padding, dilation
    Lout = (Lin - 1) * s - 2 * p + d * (K - 1) + op + 1
    y = jnp.zeros((N, Cout, Lout), jnp.float32)
    # ConvTranspose1d as the transpose of a strided conv (scatter-add form).
    for i in range(Lin):
        for k in range(K):
            l = i * s - p + k * d
            if 0 <= l < Lout:
                y = y.at[:, :, l].add(x[:, :, i] @ weight[:, :, k])
    y = y + bias.reshape(1, Cout, 1)
    mean = jnp.mean(y, axis=(0, 2), keepdims=True)
    var = jnp.mean((y - mean) ** 2, axis=(0, 2), keepdims=True)
    yhat = (y - mean) * jax.lax.rsqrt(var + eps)
    z = yhat * gamma.reshape(1, Cout, 1) + beta.reshape(1, Cout, 1)
    return jnp.maximum(z, 0.0)


if __name__ == "__main__":
    # Concat_DeConv_BN_ReLU_1dBlock(in_channels=4, out_channels=8,
    #   kernel_size=4, stride=2, padding=1, output_padding=0, bias=True)
    # applied to a list of two (2, 2, 16) tensors (concat -> (2, 4, 16)).
    N, C1, C2, Lin = 2, 2, 2, 16
    Cin = C1 + C2
    Cout, K = 8, 4
    stride, padding, output_padding, dilation = 2, 1, 0, 1

    key = jax.random.PRNGKey(0)
    k1, k2, kw, kb, kg, kbe = jax.random.split(key, 6)
    x1 = jax.random.normal(k1, (N, C1, Lin), jnp.float32)
    x2 = jax.random.normal(k2, (N, C2, Lin), jnp.float32)
    fan = Cin * K
    weight = jax.random.uniform(kw, (Cin, Cout, K), jnp.float32,
                                -1.0, 1.0) / jnp.sqrt(jnp.float32(fan))
    bias = jax.random.uniform(kb, (Cout,), jnp.float32,
                              -1.0, 1.0) / jnp.sqrt(jnp.float32(fan))
    gamma = 1.0 + 0.1 * jax.random.normal(kg, (Cout,), jnp.float32)
    beta = 0.1 * jax.random.normal(kbe, (Cout,), jnp.float32)

    run = jax.jit(functools.partial(
        concat_deconv_bn_relu_1d, stride=stride, padding=padding,
        output_padding=output_padding, dilation=dilation))
    out = jax.block_until_ready(run([x1, x2], weight, bias, gamma, beta))

    ref = _reference([x1, x2], weight, bias, gamma, beta, stride, padding,
                     output_padding, dilation)
    Lout = (Lin - 1) * stride - 2 * padding + dilation * (K - 1) \
        + output_padding + 1
    assert out.shape == (N, Cout, Lout), out.shape
    err = float(jnp.max(jnp.abs(out - ref)))
    assert jnp.allclose(out, ref, rtol=1e-3, atol=1e-3), err

    # TODO(synk): BatchNorm1d running_mean/var EMA buffer update and the
    # torch.utils.checkpoint (memory_efficient) recompute are training-side
    # state with no effect on the forward output values; not modeled here.
    print("KERNEL_OK")
</pallas_src>

<mosaic_0001>
module attributes {stable_mosaic.version = 11 : i64} {
  func.func @_fused_deconv_bn_relu_kernel(%arg0: i32, %arg1: memref<16x64xf32, #tpu.memory_space<vmem>>, %arg2: memref<8x16xf32, #tpu.memory_space<vmem>>, %arg3: memref<8x2xf32, #tpu.memory_space<vmem>>, %arg4: memref<2x8x32xf32, #tpu.memory_space<vmem>>) attributes {dimension_semantics = [#tpu.dimension_semantics<arbitrary>], iteration_bounds = array<i64: 1>, scalar_prefetch = 0 : i64, scratch_operands = 0 : i64, tpu.core_type = #tpu.core_type<tc>, window_params = [{pipeline_mode = #tpu.pipeline_mode<synchronous>, transform_indices = @transform_0, window_bounds = array<i64: 16, 64>}, {pipeline_mode = #tpu.pipeline_mode<synchronous>, transform_indices = @transform_1, window_bounds = array<i64: 8, 16>}, {pipeline_mode = #tpu.pipeline_mode<synchronous>, transform_indices = @transform_2, window_bounds = array<i64: 8, 2>}, {pipeline_mode = #tpu.pipeline_mode<synchronous>, transform_indices = @transform_3, window_bounds = array<i64: 2, 8, 32>}]} {
    %c0 = arith.constant 0 : index
    %c0_0 = arith.constant 0 : index
    %0 = vector.load %arg2[%c0, %c0_0] : memref<8x16xf32, #tpu.memory_space<vmem>>, vector<8x16xf32>
    %c0_1 = arith.constant 0 : index
    %c0_2 = arith.constant 0 : index
    %1 = vector.load %arg1[%c0_1, %c0_2] : memref<16x64xf32, #tpu.memory_space<vmem>>, vector<16x64xf32>
    %cst = arith.constant dense<0.000000e+00> : vector<8x64xf32>
    %2 = tpu.matmul %0, %1, %cst {dimension_numbers = #tpu.dot_dimension_numbers<[1], [0], [0], [1], [0, 0, 1, 1], [], []>} : vector<8x16xf32>, vector<16x64xf32>, vector<8x64xf32> -> vector<8x64xf32>
    %cst_3 = arith.constant dense<0.000000e+00> : vector<8xf32>
    %3 = vector.multi_reduction <add>, %2, %cst_3 [1] : vector<8x64xf32> to vector<8xf32>
    %4 = vector.shape_cast %3 : vector<8xf32> to vector<8x1xf32>
    %cst_4 = arith.constant 1.562500e-02 : f32
    %5 = vector.broadcast %cst_4 : f32 to vector<8x1xf32>
    %6 = arith.mulf %4, %5 : vector<8x1xf32>
    %7 = vector.broadcast %6 : vector<8x1xf32> to vector<8x64xf32>
    %8 = arith.subf %2, %7 : vector<8x64xf32>
    %9 = arith.mulf %8, %8 : vector<8x64xf32>
    %cst_5 = arith.constant dense<0.000000e+00> : vector<8xf32>
    %10 = vector.multi_reduction <add>, %9, %cst_5 [1] : vector<8x64xf32> to vector<8xf32>
    %11 = vector.shape_cast %10 : vector<8xf32> to vector<8x1xf32>
    %cst_6 = arith.constant 1.562500e-02 : f32
    %12 = vector.broadcast %cst_6 : f32 to vector<8x1xf32>
    %13 = arith.mulf %11, %12 : vector<8x1xf32>
    %cst_7 = arith.constant 9.99999974E-6 : f32
    %14 = vector.broadcast %cst_7 : f32 to vector<8x1xf32>
    %15 = arith.addf %13, %14 : vector<8x1xf32>
    %16 = math.rsqrt %15 : vector<8x1xf32>
    %c0_8 = arith.constant 0 : index
    %c0_9 = arith.constant 0 : index
    %17 = vector.load %arg3[%c0_8, %c0_9] : memref<8x2xf32, #tpu.memory_space<vmem>>, vector<8x1xf32>
    %18 = arith.mulf %17, %16 : vector<8x1xf32>
    %c0_10 = arith.constant 0 : index
    %c1 = arith.constant 1 : index
    %19 = vector.load %arg3[%c0_10, %c1] : memref<8x2xf32, #tpu.memory_space<vmem>>, vector<8x1xf32>
    %20 = arith.mulf %6, %18 : vector<8x1xf32>
    %21 = arith.subf %19, %20 : vector<8x1xf32>
    %22 = vector.broadcast %18 : vector<8x1xf32> to vector<8x64xf32>
    %23 = arith.mulf %2, %22 : vector<8x64xf32>
    %24 = vector.broadcast %21 : vector<8x1xf32> to vector<8x64xf32>
    %25 = arith.addf %23, %24 : vector<8x64xf32>
    %cst_11 = arith.constant 0.000000e+00 : f32
    %26 = vector.broadcast %cst_11 : f32 to vector<8x64xf32>
    %27 = arith.maximumf %25, %26 : vector<8x64xf32>
    %28 = vector.extract_strided_slice %27 {offsets = [0, 0], sizes = [8, 32], strides = [1, 1]} : vector<8x64xf32> to vector<8x32xf32>
    %c0_12 = arith.constant 0 : index
    %c0_13 = arith.constant 0 : index
    %c0_14 = arith.constant 0 : index
    %29 = vector.load %arg4[%c0_12, %c0_13, %c0_14] : memref<2x8x32xf32, #tpu.memory_space<vmem>>, vector<1x8x32xf32>
    %30 = vector.shape_cast %29 : vector<1x8x32xf32> to vector<8x32xf32>
    %31 = vector.shape_cast %28 : vector<8x32xf32> to vector<1x8x32xf32>
    tpu.vector_store %arg4[%c0_12, %c0_13, %c0_14], %31 {strides = array<i32>} : memref<2x8x32xf32, #tpu.memory_space<vmem>>, vector<1x8x32xf32>,
    %32 = vector.extract_strided_slice %27 {offsets = [0, 32], sizes = [8, 32], strides = [1, 1]} : vector<8x64xf32> to vector<8x32xf32>
    %c1_15 = arith.constant 1 : index
    %c0_16 = arith.constant 0 : index
    %c0_17 = arith.constant 0 : index
    %33 = vector.load %arg4[%c1_15, %c0_16, %c0_17] : memref<2x8x32xf32, #tpu.memory_space<vmem>>, vector<1x8x32xf32>
    %34 = vector.shape_cast %33 : vector<1x8x32xf32> to vector<8x32xf32>
    %35 = vector.shape_cast %32 : vector<8x32xf32> to vector<1x8x32xf32>
    tpu.vector_store %arg4[%c1_15, %c0_16, %c0_17], %35 {strides = array<i32>} : memref<2x8x32xf32, #tpu.memory_space<vmem>>, vector<1x8x32xf32>,
    return
  }
  func.func @transform_0(%arg0: i32) -> (i32, i32) {
    %c0_i32 = arith.constant 0 : i32
    %c0_i32_0 = arith.constant 0 : i32
    %c0_i32_1 = arith.constant 0 : i32
    return %c0_i32, %c0_i32_0 : i32, i32
  }
  func.func @transform_1(%arg0: i32) -> (i32, i32) {
    %c0_i32 = arith.constant 0 : i32
    %c0_i32_0 = arith.constant 0 : i32
    %c0_i32_1 = arith.constant 0 : i32
    return %c0_i32, %c0_i32_0 : i32, i32
  }
  func.func @transform_2(%arg0: i32) -> (i32, i32) {
    %c0_i32 = arith.constant 0 : i32
    %c0_i32_0 = arith.constant 0 : i32
    %c0_i32_1 = arith.constant 0 : i32
    return %c0_i32, %c0_i32_0 : i32, i32
  }
  func.func @transform_3(%arg0: i32) -> (i32, i32, i32) {
    %c0_i32 = arith.constant 0 : i32
    %c0_i32_0 = arith.constant 0 : i32
    %c0_i32_1 = arith.constant 0 : i32
    %c0_i32_2 = arith.constant 0 : i32
    return %c0_i32, %c0_i32_0, %c0_i32_1 : i32, i32, i32
  }
}

</mosaic_0001>

<bundles_post_ra>
// kernel: concat_deconv_bn_relu_1d.1
= control target key start
LH: loop header
LB: loop body
LE: loop exit
PB: predicated region body
PF: predicated region fallthrough
CT: control target
= control target key end

     0   :  { %v196_v1 = vmov 0.0   ;;  %vm197_vm0 = vmmov 0   ;;  %s240_s0 = inlined_call_operand.vmem [shape: f32[16,64], index: 0, kind: input, shape index: {}]   ;;  %s241_s1 = inlined_call_operand.vmem [shape: f32[8,16], index: 1, kind: input, shape index: {}]   ;;  %s242_s2 = inlined_call_operand.vmem [shape: f32[8,2], index: 2, kind: input, shape index: {}]   ;;  %s243_s3 = inlined_call_operand.hbm [shape: f32[2,8,32], index: 3, kind: output, shape index: {}]  }
   0x1   :  { %v17_v0 = vld [vmem:[%s240_s0 + $0x8] sm:$0xff]  ;;  %154 = vmatprep.subr.mxu0 %v196_v1  ;;  %v16_v2 = vld [vmem:[%s240_s0] sm:$0xff]  ;;  %158 = vmatprep.mubr.msk.f32.mxu0 %vm197_vm0, %v196_v1 }
   0x2   :  { %8 = vsyncpa [#allocation3], 0  ;;  %155 = vmatpush3.msra.mxu0 %v17_v0  ;;  %v15_v3 = vld [vmem:[%s241_s1] sm:$0xff]  ;;  %vm18_vm1 = vcmask 130048   ;;  %vm92_vm2 = vcmask 523264   ;;  %v198_v12 = vmov 0  }
   0x3   :  { %156 = vmatprep.subr.mxu0 %v196_v1  ;;  %170 = vset.pattern.permute.xlu1 %v198_v12  ;;  %v199_v16 = vmov 1   ;;  %v105_v17 = vld [vmem:[%s242_s2] sm:$0xff]  ;;  %s200_s18 = smov 1   ;;  %vm126_vm3 = vcmask 261120   ;;  %s201_s19 = smov 96  }
   0x4   :  { %157 = vmatpush3.msra.mxu0 %v16_v2  ;;  %171 = vset.pattern.permute.xlu0 %v199_v16  ;;  %s202_s20 = smov [#allocation2]  }
   0x5   :  { %159 = vmatmul.mubr.msk.f32.vlgmr.msra.gmra.mxu0 %vm18_vm1, %v15_v3  ;;  %s139_s2 = sshll.u32 %s202_s20, 4  ;;  %s140_s2 = int_to_ptr.vmem [resolvable:$true] %s139_s2 }
   0x6   :  { %s174_s21 = scalar_lea.vmem %s140_s2, 256  ;;  %p179_p1 = scmp.lt.s32.totalorder %s140_s2, %s140_s2 }
   0x7   :  { %p175_p0 = scmp.ne.s32.totalorder %s140_s2, %s174_s21  ;;  %p180_p2 = scmp.lt.s32.totalorder %s174_s21, %s174_s21 }
   0x9   :  { %p181_p3 = por %p180_p2, %p179_p1 }
   0xb   :  { %p182_p4 = pnand %p181_p3, %p175_p0 }
  0xc5   :  { %v88_v4 = vpop.f32.mrf.mxu0 }
  0xc6   :  { %v93_v5 = vsel %vm92_vm2, %v88_v4, 0.0 }
  0xc7   :  { %94 = vadd.xlane.f32.xlu0 %v93_v5  ;;  %v160_v6 = vpop.f32.mrf.mxu0 }
 0x150   :  { %v95_v7 = vpop.xlane.xlu0 %94 }
 0x151   :  { %v96_v8 = vmul.f32 0.015625, %v95_v7 }
 0x153   :  { %v97_v9 = vsub.f32 %v88_v4, %v96_v8 }
 0x155   :  { %v98_v10 = vmul.f32 %v97_v9, %v97_v9 }
 0x157   :  { %v99_v11 = vsel %vm92_vm2, %v98_v10, 0.0 }
 0x158   :  { %100 = vadd.xlane.f32.xlu0 %v99_v11 }
 0x1e1   :  { %v101_v13 = vpop.xlane.xlu0 %100 }
 0x1e2   :  { %v102_v14 = vmul.f32 0.015625, %v101_v13 }
 0x1e4   :  { %v103_v15 = vadd.f32 1e-05, %v102_v14 }
 0x1e6   :  { %172 = vrsqrt.f32 %v103_v15 }
 0x1f3   :  { %v173_v18 = vpop.eup %172 }
 0x1f4   :  { %v106_v19 = vmul.f32 %v173_v18, %v105_v17 }
 0x1f6   :  { %v107_v20 = vmul.f32 %v106_v19, %v96_v8 }
 0x1f8   :  { %109 = vrot.lane.b32.xlu1 %v107_v20, %s200_s18 }
 0x1fc   :  { %115 = vperm.xlu1 %170, %v106_v19  }
 0x26a   :  { %v110_v21 = vpop.permute.xlu1 %109 }
 0x26b   :  { %v112_v22 = vsub.f32 %v105_v17, %v110_v21 }
 0x26d   :  { %121 = vperm.xlu0 %171, %v112_v22  }
 0x277   :  { %v116_v23 = vpop.permute.xlu1 %115 }
 0x278   :  { %v118_v24 = vmul.f32 %v116_v23, %v88_v4 }
 0x2e8   :  { %v122_v25 = vpop.permute.xlu0 %121 }
 0x2e9   :  { %v124_v26 = vadd.f32 %v122_v25, %v118_v24 }
 0x2eb   :  { %v125_v27 = vmax.f32 %v124_v26, 0.0 }
 0x2ed   :  { %129 = vrot.lane.b32.xlu1 %v125_v27, %s201_s19  ;;  %127 = vst.msk [vmem:[#allocation2] sm:$0xff] %vm126_vm3, %v125_v27 }
 0x35f   :  { %v130_v28 = vpop.permute.xlu1 %129 }
 0x360   :  { %133 = vst.msk [vmem:[#allocation2 + $0x8] sm:$0xff] %vm126_vm3, %v130_v28 }
 0x361   :  { %185 = shalt.err (!%p182_p4)
}
 0x362   :  { %s203_s22 = smov 128   ;;  %s204_s23 = smov 8  }
 0x363   :  { %145 = dma.vmem_to_hbm [thread:$0]  %s140_s2, 256, %s243_s3, [#allocation3], %s203_s22, %s203_s22, %s204_s23  }
 0x364   :  { %194 = dma.done.wait [#allocation3], 256  }
 0x365   :  { %195 = vsyncadd [#allocation3], 4294967040 }
 0x366   :  { %149 = vsyncpa [#allocation3], 1 }

</bundles_post_ra>
